<compile_context>
chip_gen: v5e
topology: v5e:2x2
jax: 0.10.0
libtpu: 0.0.40
codegen_flags: <defaults>
</compile_context>

<pallas_src>
import functools

import jax
import jax.numpy as jnp
from jax.experimental import pallas as pl
from jax.experimental.pallas import tpu as pltpu


# ----------------------------------------------------------------------------
# Chip-aware helpers
# ----------------------------------------------------------------------------
def _vmem_cap_bytes():
    """Physical VMEM of the current chip (used for tiling + vmem_limit_bytes)."""
    try:
        return int(pltpu.get_tpu_info().vmem_capacity_bytes)
    except Exception:
        return 64 * 1024 * 1024  # conservative default (v7x per-TensorCore VMEM)


def _pick_row_tile(H, bytes_per_row, budget_bytes):
    """Largest row-tile th dividing H (multiple of 8, or H itself) under budget."""
    cands = [t for t in range(1, H + 1) if H % t == 0 and (t % 8 == 0 or t == H)]
    fits = [t for t in cands if t * bytes_per_row <= budget_bytes]
    return max(fits) if fits else min(cands)


def _banded_weights(w, W):
    """torch (Cout, Cin, 3, 3) -> (3, Cin*W, Cout*W) bf16 banded matrices.

    Wb[dy][ci*W + cx, co*W + c] = w[co, ci, dy, dx] with cx = c + dx - 1;
    entries with cx outside [0, W) are dropped == the horizontal zero pad.
    """
    Cout, Cin, KH, KW = w.shape
    mats = []
    for dy in range(KH):
        m = jnp.zeros((Cin * W, Cout * W), jnp.float32)
        for dx in range(KW):
            m = m + jnp.kron(w[:, :, dy, dx].T.astype(jnp.float32),
                             jnp.eye(W, W, k=1 - dx, dtype=jnp.float32))
        mats.append(m)
    # TODO(synk): for large W*Cin / W*Cout this banded-weight formulation should
    # switch to an im2col-in-VMEM patch build with Cout tiled at 256.
    return jnp.stack(mats).astype(jnp.bfloat16)


# ----------------------------------------------------------------------------
# Kernel 1: fused 3x3 conv (+ bias) + BN partial statistics, lane-dense output.
# ----------------------------------------------------------------------------
def _conv3x3_kernel(x_ref, wb_ref, b_ref, y_ref, s1_ref, s2_ref, xpad_ref,
                    *, th, H, W, Cin, Cout):
    # x_ref   : (1, Cin, H, W)      f32  raw NCHW input, resident across i
    # wb_ref  : (3, Cin*W, Cout*W)  bf16 banded weights (dy-indexed)
    # b_ref   : (1, Cout*W)         f32  bias, repeated W times per channel
    # y_ref   : (1, th, Cout*W)     f32  lane-dense conv output tile
    # s1/s2   : (1, 1, 1, Cout*W)   f32  per-tile sum / sum-of-squares partials
    # xpad_ref: (H+16, Cin*W)       f32  zero-padded channel-merged image
    i = pl.program_id(1)

    # Build the padded channel-merged image once per batch element.  The image
    # lives at scratch rows [8, 8+H); rows 0..7 and 8+H.. stay zero and provide
    # the vertical halo (the horizontal halo is folded into the banded weights).
    @pl.when(i == 0)
    def _build():
        xpad_ref[...] = jnp.zeros(xpad_ref.shape, xpad_ref.dtype)
        for ci in range(Cin):  # NCHW -> (H, Cin*W) lane merge, done once in VMEM
            xpad_ref[pl.ds(8, H), pl.ds(ci * W, W)] = x_ref[0, ci]

    r0 = i * th
    if th % 8 == 0:
        r0 = pl.multiple_of(r0, 8)

    # One aligned window load; the three dy taps are static sublane-shifted
    # views of it (layout-preserving, no tile-crossing reshape), cast to bf16
    # right before the MXU (f32 accumulation).
    xwin = xpad_ref[pl.ds(r0, th + 16), :]
    a0 = xwin[7:7 + th, :].astype(jnp.bfloat16)
    a1 = xwin[8:8 + th, :].astype(jnp.bfloat16)
    a2 = xwin[9:9 + th, :].astype(jnp.bfloat16)

    acc = jnp.dot(a0, wb_ref[0], preferred_element_type=jnp.float32)
    acc = acc + jnp.dot(a1, wb_ref[1], preferred_element_type=jnp.float32)
    acc = acc + jnp.dot(a2, wb_ref[2], preferred_element_type=jnp.float32)
    acc = acc + b_ref[...]                       # (1, Cout*W) broadcasts

    y_ref[0] = acc                               # unmasked 128-lane stores
    s1_ref[0, 0] = jnp.sum(acc, axis=0, keepdims=True)        # BN partials
    s2_ref[0, 0] = jnp.sum(acc * acc, axis=0, keepdims=True)


def _conv3x3_bias_stats(x, w, b, vmem_cap):
    """x: (N, Cin, H, W) f32, w: torch (Cout, Cin, 3, 3), b: (Cout,).

    Returns (y, s1, s2):
      y  : (N, H, Cout*W) f32, lane index = co*W + c  (lane-dense conv+bias)
      s1 : (N, n_tiles, 1, Cout*W) per-tile sums
      s2 : (N, n_tiles, 1, Cout*W) per-tile sums of squares
    """
    N, Cin, H, W = x.shape
    Cout = w.shape[0]
    CW = Cout * W

    wb = _banded_weights(w, W)                                       # bf16
    b_rep = jnp.repeat(b.astype(jnp.float32), W).reshape(1, CW)

    bytes_per_row = 3 * CW * 4 + Cin * W * 6
    th = _pick_row_tile(H, bytes_per_row, vmem_cap // 16)
    nt = H // th

    est = (2 * Cin * H * W * 4 + 3 * Cin * W * CW * 2 + CW * 4
           + 2 * th * CW * 4 + 4 * CW * 4
           + (H + 16) * Cin * W * 4 + (th + 16) * Cin * W * 6 + th * CW * 4)
    vmem_limit = int(min(vmem_cap, max(32 * 1024 * 1024, 2 * est)))
    # TODO(synk): if the resident padded image itself exceeds the VMEM budget,
    # fall back to a halo'd row-tile manual-DMA pipeline (pl.ANY + make_async_copy).

    kernel = functools.partial(_conv3x3_kernel,
                               th=th, H=H, W=W, Cin=Cin, Cout=Cout)
    y, s1, s2 = pl.pallas_call(
        kernel,
        out_shape=(jax.ShapeDtypeStruct((N, H, CW), jnp.float32),
                   jax.ShapeDtypeStruct((N, nt, 1, CW), jnp.float32),
                   jax.ShapeDtypeStruct((N, nt, 1, CW), jnp.float32)),
        grid_spec=pltpu.PrefetchScalarGridSpec(
            num_scalar_prefetch=0,
            grid=(N, nt),
            in_specs=[
                pl.BlockSpec((1, Cin, H, W), lambda n, i: (n, 0, 0, 0)),
                pl.BlockSpec((3, Cin * W, CW), lambda n, i: (0, 0, 0)),
                pl.BlockSpec((1, CW), lambda n, i: (0, 0)),
            ],
            out_specs=[
                pl.BlockSpec((1, th, CW), lambda n, i: (n, i, 0)),
                pl.BlockSpec((1, 1, 1, CW), lambda n, i: (n, i, 0, 0)),
                pl.BlockSpec((1, 1, 1, CW), lambda n, i: (n, i, 0, 0)),
            ],
            scratch_shapes=[pltpu.VMEM((H + 16, Cin * W), jnp.float32)],
        ),
        compiler_params=pltpu.CompilerParams(
            # Batch is the megacore split axis; the image block and scratch are
            # resident across the row-tile axis, which therefore stays arbitrary.
            dimension_semantics=("parallel", "arbitrary"),
            vmem_limit_bytes=vmem_limit),
    )(x, wb, b_rep)
    return y, s1, s2


# ----------------------------------------------------------------------------
# Kernel 2: fused BatchNorm-apply + ReLU + NCHW conversion (lane-dense reads).
# ----------------------------------------------------------------------------
def _bn_relu_nchw_kernel(y_ref, scale_ref, shift_ref, o_ref, *, W, Cout):
    # y_ref       : (1, th, Cout*W) f32 lane-dense conv output tile
    # scale/shift : (1, Cout*W)     f32 per-channel BN scale/shift, W-repeated
    # o_ref       : (1, Cout, th, W) f32 final NCHW output block
    t = jnp.maximum(y_ref[0] * scale_ref[...] + shift_ref[...], 0.0)
    for co in range(Cout):       # fused layout conversion: static lane windows
        o_ref[0, co] = t[:, co * W:(co + 1) * W]


def _bn_relu_to_nchw(y, scale, shift, W, Cout, vmem_cap):
    N, H, CW = y.shape
    scale_rep = jnp.repeat(scale.astype(jnp.float32), W).reshape(1, CW)
    shift_rep = jnp.repeat(shift.astype(jnp.float32), W).reshape(1, CW)

    th = _pick_row_tile(H, 4 * CW * 4, vmem_cap // 16)
    est = 4 * th * CW * 4 + 2 * CW * 4 + 2 * th * CW * 4
    vmem_limit = int(min(vmem_cap, max(32 * 1024 * 1024, 2 * est)))

    kernel = functools.partial(_bn_relu_nchw_kernel, W=W, Cout=Cout)
    return pl.pallas_call(
        kernel,
        out_shape=jax.ShapeDtypeStruct((N, Cout, H, W), jnp.float32),
        grid_spec=pltpu.PrefetchScalarGridSpec(
            num_scalar_prefetch=0,
            grid=(N, H // th),
            in_specs=[
                pl.BlockSpec((1, th, CW), lambda n, i: (n, i, 0)),
                pl.BlockSpec((1, CW), lambda n, i: (0, 0)),
                pl.BlockSpec((1, CW), lambda n, i: (0, 0)),
            ],
            out_specs=pl.BlockSpec((1, Cout, th, W), lambda n, i: (n, 0, i, 0)),
        ),
        compiler_params=pltpu.CompilerParams(
            dimension_semantics=("parallel", "parallel"),
            vmem_limit_bytes=vmem_limit),
    )(y, scale_rep, shift_rep)


# ----------------------------------------------------------------------------
# _FCNConvBlock forward:  conv3x3(pad=1) -> BatchNorm2d (batch stats) -> ReLU
# ----------------------------------------------------------------------------
def fcn_conv_block(x_nchw, w, b, *, eps=1e-5):
    N, Cin, H, W = x_nchw.shape
    Cout = w.shape[0]
    vmem_cap = _vmem_cap_bytes()

    y, s1_p, s2_p = _conv3x3_bias_stats(x_nchw.astype(jnp.float32), w, b, vmem_cap)

    # Train-mode BatchNorm2d statistics (biased variance), gamma=1, beta=0.
    # Only the tiny per-tile partials are reduced here (f32 throughout).
    cnt = float(N * H * W)
    s1 = jnp.sum(s1_p, axis=(0, 1, 2)).reshape(Cout, W).sum(axis=-1)
    s2 = jnp.sum(s2_p, axis=(0, 1, 2)).reshape(Cout, W).sum(axis=-1)
    mean = s1 / cnt
    var = jnp.maximum(s2 / cnt - mean * mean, 0.0)
    scale = jax.lax.rsqrt(var + eps)
    shift = -mean * scale

    return _bn_relu_to_nchw(y, scale, shift, W, Cout, vmem_cap)


# ----------------------------------------------------------------------------
# Pure-JAX reference (f32 end-to-end) for a sanity check.
# ----------------------------------------------------------------------------
def _reference_fcn_conv_block(x_nchw, w, b, eps=1e-5):
    y = jax.lax.conv_general_dilated(
        x_nchw.astype(jnp.float32), w.astype(jnp.float32),
        window_strides=(1, 1), padding=((1, 1), (1, 1)),
        dimension_numbers=("NCHW", "OIHW", "NCHW")) + b.reshape(1, -1, 1, 1)
    mean = jnp.mean(y, axis=(0, 2, 3), keepdims=True)
    var = jnp.mean(jnp.square(y - mean), axis=(0, 2, 3), keepdims=True)
    return jnp.maximum((y - mean) * jax.lax.rsqrt(var + eps), 0.0)


if __name__ == "__main__":
    key = jax.random.PRNGKey(0)
    kx, kw, kb = jax.random.split(key, 3)

    N, Cin, Cout, H, W = 2, 4, 8, 16, 16
    x = jax.random.normal(kx, (N, Cin, H, W), jnp.float32)
    w = 0.2 * jax.random.normal(kw, (Cout, Cin, 3, 3), jnp.float32)
    b = 0.1 * jax.random.normal(kb, (Cout,), jnp.float32)

    fwd = jax.jit(fcn_conv_block)
    out = jax.block_until_ready(fwd(x, w, b))

    assert out.shape == (N, Cout, H, W), out.shape
    assert out.dtype == jnp.float32

    ref = _reference_fcn_conv_block(x, w, b)
    rms = jnp.sqrt(jnp.mean(jnp.square(out - ref)) /
                   (jnp.mean(jnp.square(ref)) + 1e-12))
    max_abs = jnp.max(jnp.abs(out - ref))
    assert float(rms) < 2e-2 and float(max_abs) < 1e-1, (float(rms), float(max_abs))

    print("KERNEL_OK")
</pallas_src>

<mosaic_0001>
module attributes {stable_mosaic.version = 11 : i64} {
  func.func @_conv3x3_kernel(%arg0: i32, %arg1: i32, %arg2: memref<1x4x16x16xf32, #tpu.memory_space<vmem>>, %arg3: memref<3x64x128xbf16, #tpu.memory_space<vmem>>, %arg4: memref<1x128xf32, #tpu.memory_space<vmem>>, %arg5: memref<1x16x128xf32, #tpu.memory_space<vmem>>, %arg6: memref<1x1x1x128xf32, #tpu.memory_space<vmem>>, %arg7: memref<1x1x1x128xf32, #tpu.memory_space<vmem>>, %arg8: memref<32x64xf32, #tpu.memory_space<vmem>>) attributes {dimension_semantics = [#tpu.dimension_semantics<parallel>, #tpu.dimension_semantics<arbitrary>], iteration_bounds = array<i64: 2, 1>, scalar_prefetch = 0 : i64, scratch_operands = 1 : i64, tpu.core_type = #tpu.core_type<tc>, window_params = [{transform_indices = @transform_0, window_bounds = array<i64: 1, 4, 16, 16>}, {pipeline_mode = #tpu.pipeline_mode<synchronous>, transform_indices = @transform_1, window_bounds = array<i64: 3, 64, 128>}, {pipeline_mode = #tpu.pipeline_mode<synchronous>, transform_indices = @transform_2, window_bounds = array<i64: 1, 128>}, {transform_indices = @transform_3, window_bounds = array<i64: 1, 16, 128>}, {transform_indices = @transform_4, window_bounds = array<i64: 1, 1, 1, 128>}, {transform_indices = @transform_5, window_bounds = array<i64: 1, 1, 1, 128>}]} {
    %c0_i32 = arith.constant 0 : i32
    %0 = arith.cmpi eq, %arg1, %c0_i32 : i32
    %1 = arith.extui %0 : i1 to i32
    %c0_i32_0 = arith.constant 0 : i32
    %2 = arith.cmpi ne, %1, %c0_i32_0 : i32
    scf.if %2 {
      %cst_25 = arith.constant 0.000000e+00 : f32
      %41 = vector.broadcast %cst_25 : f32 to vector<32x64xf32>
      %c0_26 = arith.constant 0 : index
      %c0_27 = arith.constant 0 : index
      %42 = vector.load %arg8[%c0_26, %c0_27] : memref<32x64xf32, #tpu.memory_space<vmem>>, vector<32x64xf32>
      tpu.vector_store %arg8[%c0_26, %c0_27], %41 {strides = array<i32>} : memref<32x64xf32, #tpu.memory_space<vmem>>, vector<32x64xf32>,
      %c0_28 = arith.constant 0 : index
      %c0_29 = arith.constant 0 : index
      %c0_30 = arith.constant 0 : index
      %c0_31 = arith.constant 0 : index
      %43 = vector.load %arg2[%c0_28, %c0_29, %c0_30, %c0_31] : memref<1x4x16x16xf32, #tpu.memory_space<vmem>>, vector<1x1x16x16xf32>
      %44 = vector.shape_cast %43 : vector<1x1x16x16xf32> to vector<16x16xf32>
      %c8 = arith.constant 8 : index
      %c0_32 = arith.constant 0 : index
      %45 = vector.load %arg8[%c8, %c0_32] : memref<32x64xf32, #tpu.memory_space<vmem>>, vector<16x16xf32>
      tpu.vector_store %arg8[%c8, %c0_32], %44 {strides = array<i32>} : memref<32x64xf32, #tpu.memory_space<vmem>>, vector<16x16xf32>,
      %c0_33 = arith.constant 0 : index
      %c1_34 = arith.constant 1 : index
      %c0_35 = arith.constant 0 : index
      %c0_36 = arith.constant 0 : index
      %46 = vector.load %arg2[%c0_33, %c1_34, %c0_35, %c0_36] : memref<1x4x16x16xf32, #tpu.memory_space<vmem>>, vector<1x1x16x16xf32>
      %47 = vector.shape_cast %46 : vector<1x1x16x16xf32> to vector<16x16xf32>
      %c8_37 = arith.constant 8 : index
      %c16 = arith.constant 16 : index
      %48 = vector.load %arg8[%c8_37, %c16] : memref<32x64xf32, #tpu.memory_space<vmem>>, vector<16x16xf32>
      tpu.vector_store %arg8[%c8_37, %c16], %47 {strides = array<i32>} : memref<32x64xf32, #tpu.memory_space<vmem>>, vector<16x16xf32>,
      %c0_38 = arith.constant 0 : index
      %c2_39 = arith.constant 2 : index
      %c0_40 = arith.constant 0 : index
      %c0_41 = arith.constant 0 : index
      %49 = vector.load %arg2[%c0_38, %c2_39, %c0_40, %c0_41] : memref<1x4x16x16xf32, #tpu.memory_space<vmem>>, vector<1x1x16x16xf32>
      %50 = vector.shape_cast %49 : vector<1x1x16x16xf32> to vector<16x16xf32>
      %c8_42 = arith.constant 8 : index
      %c32 = arith.constant 32 : index
      %51 = vector.load %arg8[%c8_42, %c32] : memref<32x64xf32, #tpu.memory_space<vmem>>, vector<16x16xf32>
      tpu.vector_store %arg8[%c8_42, %c32], %50 {strides = array<i32>} : memref<32x64xf32, #tpu.memory_space<vmem>>, vector<16x16xf32>,
      %c0_43 = arith.constant 0 : index
      %c3 = arith.constant 3 : index
      %c0_44 = arith.constant 0 : index
      %c0_45 = arith.constant 0 : index
      %52 = vector.load %arg2[%c0_43, %c3, %c0_44, %c0_45] : memref<1x4x16x16xf32, #tpu.memory_space<vmem>>, vector<1x1x16x16xf32>
      %53 = vector.shape_cast %52 : vector<1x1x16x16xf32> to vector<16x16xf32>
      %c8_46 = arith.constant 8 : index
      %c48 = arith.constant 48 : index
      %54 = vector.load %arg8[%c8_46, %c48] : memref<32x64xf32, #tpu.memory_space<vmem>>, vector<16x16xf32>
      tpu.vector_store %arg8[%c8_46, %c48], %53 {strides = array<i32>} : memref<32x64xf32, #tpu.memory_space<vmem>>, vector<16x16xf32>,
    } else {
    }
    %c16_i32 = arith.constant 16 : i32
    %3 = arith.muli %arg1, %c16_i32 : i32
    %4 = tpu.assume_multiple %3, 8 : i32
    %5 = arith.index_cast %4 : i32 to index
    %c0 = arith.constant 0 : index
    %6 = vector.load %arg8[%5, %c0] : memref<32x64xf32, #tpu.memory_space<vmem>>, vector<32x64xf32>
    %7 = vector.extract_strided_slice %6 {offsets = [7, 0], sizes = [16, 64], strides = [1, 1]} : vector<32x64xf32> to vector<16x64xf32>
    %8 = arith.truncf %7 : vector<16x64xf32> to vector<16x64xbf16>
    %9 = vector.extract_strided_slice %6 {offsets = [8, 0], sizes = [16, 64], strides = [1, 1]} : vector<32x64xf32> to vector<16x64xf32>
    %10 = arith.truncf %9 : vector<16x64xf32> to vector<16x64xbf16>
    %11 = vector.extract_strided_slice %6 {offsets = [9, 0], sizes = [16, 64], strides = [1, 1]} : vector<32x64xf32> to vector<16x64xf32>
    %12 = arith.truncf %11 : vector<16x64xf32> to vector<16x64xbf16>
    %c0_1 = arith.constant 0 : index
    %c0_2 = arith.constant 0 : index
    %c0_3 = arith.constant 0 : index
    %13 = vector.load %arg3[%c0_1, %c0_2, %c0_3] : memref<3x64x128xbf16, #tpu.memory_space<vmem>>, vector<1x64x128xbf16>
    %14 = vector.shape_cast %13 : vector<1x64x128xbf16> to vector<64x128xbf16>
    %cst = arith.constant dense<0.000000e+00> : vector<16x128xf32>
    %15 = tpu.matmul %8, %14, %cst {dimension_numbers = #tpu.dot_dimension_numbers<[1], [0], [0], [1], [0, 0, 1, 1], [], []>} : vector<16x64xbf16>, vector<64x128xbf16>, vector<16x128xf32> -> vector<16x128xf32>
    %c1 = arith.constant 1 : index
    %c0_4 = arith.constant 0 : index
    %c0_5 = arith.constant 0 : index
    %16 = vector.load %arg3[%c1, %c0_4, %c0_5] : memref<3x64x128xbf16, #tpu.memory_space<vmem>>, vector<1x64x128xbf16>
    %17 = vector.shape_cast %16 : vector<1x64x128xbf16> to vector<64x128xbf16>
    %cst_6 = arith.constant dense<0.000000e+00> : vector<16x128xf32>
    %18 = tpu.matmul %10, %17, %cst_6 {dimension_numbers = #tpu.dot_dimension_numbers<[1], [0], [0], [1], [0, 0, 1, 1], [], []>} : vector<16x64xbf16>, vector<64x128xbf16>, vector<16x128xf32> -> vector<16x128xf32>
    %19 = arith.addf %15, %18 : vector<16x128xf32>
    %c2 = arith.constant 2 : index
    %c0_7 = arith.constant 0 : index
    %c0_8 = arith.constant 0 : index
    %20 = vector.load %arg3[%c2, %c0_7, %c0_8] : memref<3x64x128xbf16, #tpu.memory_space<vmem>>, vector<1x64x128xbf16>
    %21 = vector.shape_cast %20 : vector<1x64x128xbf16> to vector<64x128xbf16>
    %cst_9 = arith.constant dense<0.000000e+00> : vector<16x128xf32>
    %22 = tpu.matmul %12, %21, %cst_9 {dimension_numbers = #tpu.dot_dimension_numbers<[1], [0], [0], [1], [0, 0, 1, 1], [], []>} : vector<16x64xbf16>, vector<64x128xbf16>, vector<16x128xf32> -> vector<16x128xf32>
    %23 = arith.addf %19, %22 : vector<16x128xf32>
    %c0_10 = arith.constant 0 : index
    %c0_11 = arith.constant 0 : index
    %24 = vector.load %arg4[%c0_10, %c0_11] : memref<1x128xf32, #tpu.memory_space<vmem>>, vector<1x128xf32>
    %25 = vector.broadcast %24 : vector<1x128xf32> to vector<16x128xf32>
    %26 = arith.addf %23, %25 : vector<16x128xf32>
    %c0_12 = arith.constant 0 : index
    %c0_13 = arith.constant 0 : index
    %c0_14 = arith.constant 0 : index
    %27 = vector.load %arg5[%c0_12, %c0_13, %c0_14] : memref<1x16x128xf32, #tpu.memory_space<vmem>>, vector<1x16x128xf32>
    %28 = vector.shape_cast %27 : vector<1x16x128xf32> to vector<16x128xf32>
    %29 = vector.shape_cast %26 : vector<16x128xf32> to vector<1x16x128xf32>
    tpu.vector_store %arg5[%c0_12, %c0_13, %c0_14], %29 {strides = array<i32>} : memref<1x16x128xf32, #tpu.memory_space<vmem>>, vector<1x16x128xf32>,
    %cst_15 = arith.constant dense<0.000000e+00> : vector<128xf32>
    %30 = vector.multi_reduction <add>, %26, %cst_15 [0] : vector<16x128xf32> to vector<128xf32>
    %31 = vector.shape_cast %30 : vector<128xf32> to vector<1x128xf32>
    %c0_16 = arith.constant 0 : index
    %c0_17 = arith.constant 0 : index
    %c0_18 = arith.constant 0 : index
    %c0_19 = arith.constant 0 : index
    %32 = vector.load %arg6[%c0_16, %c0_17, %c0_18, %c0_19] : memref<1x1x1x128xf32, #tpu.memory_space<vmem>>, vector<1x1x1x128xf32>
    %33 = vector.shape_cast %32 : vector<1x1x1x128xf32> to vector<1x128xf32>
    %34 = vector.shape_cast %31 : vector<1x128xf32> to vector<1x1x1x128xf32>
    tpu.vector_store %arg6[%c0_16, %c0_17, %c0_18, %c0_19], %34 {strides = array<i32>} : memref<1x1x1x128xf32, #tpu.memory_space<vmem>>, vector<1x1x1x128xf32>,
    %35 = arith.mulf %26, %26 : vector<16x128xf32>
    %cst_20 = arith.constant dense<0.000000e+00> : vector<128xf32>
    %36 = vector.multi_reduction <add>, %35, %cst_20 [0] : vector<16x128xf32> to vector<128xf32>
    %37 = vector.shape_cast %36 : vector<128xf32> to vector<1x128xf32>
    %c0_21 = arith.constant 0 : index
    %c0_22 = arith.constant 0 : index
    %c0_23 = arith.constant 0 : index
    %c0_24 = arith.constant 0 : index
    %38 = vector.load %arg7[%c0_21, %c0_22, %c0_23, %c0_24] : memref<1x1x1x128xf32, #tpu.memory_space<vmem>>, vector<1x1x1x128xf32>
    %39 = vector.shape_cast %38 : vector<1x1x1x128xf32> to vector<1x128xf32>
    %40 = vector.shape_cast %37 : vector<1x128xf32> to vector<1x1x1x128xf32>
    tpu.vector_store %arg7[%c0_21, %c0_22, %c0_23, %c0_24], %40 {strides = array<i32>} : memref<1x1x1x128xf32, #tpu.memory_space<vmem>>, vector<1x1x1x128xf32>,
    return
  }
  func.func @transform_0(%arg0: i32, %arg1: i32) -> (i32, i32, i32, i32) {
    %c0_i32 = arith.constant 0 : i32
    %c0_i32_0 = arith.constant 0 : i32
    %c0_i32_1 = arith.constant 0 : i32
    %c0_i32_2 = arith.constant 0 : i32
    return %arg0, %c0_i32, %c0_i32_0, %c0_i32_1 : i32, i32, i32, i32
  }
  func.func @transform_1(%arg0: i32, %arg1: i32) -> (i32, i32, i32) {
    %c0_i32 = arith.constant 0 : i32
    %c0_i32_0 = arith.constant 0 : i32
    %c0_i32_1 = arith.constant 0 : i32
    %c0_i32_2 = arith.constant 0 : i32
    return %c0_i32, %c0_i32_0, %c0_i32_1 : i32, i32, i32
  }
  func.func @transform_2(%arg0: i32, %arg1: i32) -> (i32, i32) {
    %c0_i32 = arith.constant 0 : i32
    %c0_i32_0 = arith.constant 0 : i32
    %c0_i32_1 = arith.constant 0 : i32
    return %c0_i32, %c0_i32_0 : i32, i32
  }
  func.func @transform_3(%arg0: i32, %arg1: i32) -> (i32, i32, i32) {
    %c0_i32 = arith.constant 0 : i32
    %c0_i32_0 = arith.constant 0 : i32
    return %arg0, %arg1, %c0_i32 : i32, i32, i32
  }
  func.func @transform_4(%arg0: i32, %arg1: i32) -> (i32, i32, i32, i32) {
    %c0_i32 = arith.constant 0 : i32
    %c0_i32_0 = arith.constant 0 : i32
    %c0_i32_1 = arith.constant 0 : i32
    return %arg0, %arg1, %c0_i32, %c0_i32_0 : i32, i32, i32, i32
  }
  func.func @transform_5(%arg0: i32, %arg1: i32) -> (i32, i32, i32, i32) {
    %c0_i32 = arith.constant 0 : i32
    %c0_i32_0 = arith.constant 0 : i32
    %c0_i32_1 = arith.constant 0 : i32
    return %arg0, %arg1, %c0_i32, %c0_i32_0 : i32, i32, i32, i32
  }
}

module attributes {stable_mosaic.version = 11 : i64} {
  func.func @_bn_relu_nchw_kernel(%arg0: i32, %arg1: i32, %arg2: memref<1x16x128xf32, #tpu.memory_space<vmem>>, %arg3: memref<1x128xf32, #tpu.memory_space<vmem>>, %arg4: memref<1x128xf32, #tpu.memory_space<vmem>>, %arg5: memref<1x8x16x16xf32, #tpu.memory_space<vmem>>) attributes {dimension_semantics = [#tpu.dimension_semantics<parallel>, #tpu.dimension_semantics<parallel>], iteration_bounds = array<i64: 2, 1>, scalar_prefetch = 0 : i64, scratch_operands = 0 : i64, tpu.core_type = #tpu.core_type<tc>, window_params = [{transform_indices = @transform_0, window_bounds = array<i64: 1, 16, 128>}, {pipeline_mode = #tpu.pipeline_mode<synchronous>, transform_indices = @transform_1, window_bounds = array<i64: 1, 128>}, {pipeline_mode = #tpu.pipeline_mode<synchronous>, transform_indices = @transform_2, window_bounds = array<i64: 1, 128>}, {transform_indices = @transform_3, window_bounds = array<i64: 1, 8, 16, 16>}]} {
    %c0 = arith.constant 0 : index
    %c0_0 = arith.constant 0 : index
    %c0_1 = arith.constant 0 : index
    %0 = vector.load %arg2[%c0, %c0_0, %c0_1] : memref<1x16x128xf32, #tpu.memory_space<vmem>>, vector<1x16x128xf32>
    %1 = vector.shape_cast %0 : vector<1x16x128xf32> to vector<16x128xf32>
    %c0_2 = arith.constant 0 : index
    %c0_3 = arith.constant 0 : index
    %2 = vector.load %arg3[%c0_2, %c0_3] : memref<1x128xf32, #tpu.memory_space<vmem>>, vector<1x128xf32>
    %3 = vector.broadcast %2 : vector<1x128xf32> to vector<16x128xf32>
    %4 = arith.mulf %1, %3 : vector<16x128xf32>
    %c0_4 = arith.constant 0 : index
    %c0_5 = arith.constant 0 : index
    %5 = vector.load %arg4[%c0_4, %c0_5] : memref<1x128xf32, #tpu.memory_space<vmem>>, vector<1x128xf32>
    %6 = vector.broadcast %5 : vector<1x128xf32> to vector<16x128xf32>
    %7 = arith.addf %4, %6 : vector<16x128xf32>
    %cst = arith.constant 0.000000e+00 : f32
    %8 = vector.broadcast %cst : f32 to vector<16x128xf32>
    %9 = arith.maximumf %7, %8 : vector<16x128xf32>
    %10 = vector.extract_strided_slice %9 {offsets = [0, 0], sizes = [16, 16], strides = [1, 1]} : vector<16x128xf32> to vector<16x16xf32>
    %c0_6 = arith.constant 0 : index
    %c0_7 = arith.constant 0 : index
    %c0_8 = arith.constant 0 : index
    %c0_9 = arith.constant 0 : index
    %11 = vector.load %arg5[%c0_6, %c0_7, %c0_8, %c0_9] : memref<1x8x16x16xf32, #tpu.memory_space<vmem>>, vector<1x1x16x16xf32>
    %12 = vector.shape_cast %11 : vector<1x1x16x16xf32> to vector<16x16xf32>
    %13 = vector.shape_cast %10 : vector<16x16xf32> to vector<1x1x16x16xf32>
    tpu.vector_store %arg5[%c0_6, %c0_7, %c0_8, %c0_9], %13 {strides = array<i32>} : memref<1x8x16x16xf32, #tpu.memory_space<vmem>>, vector<1x1x16x16xf32>,
    %14 = vector.extract_strided_slice %9 {offsets = [0, 16], sizes = [16, 16], strides = [1, 1]} : vector<16x128xf32> to vector<16x16xf32>
    %c0_10 = arith.constant 0 : index
    %c1 = arith.constant 1 : index
    %c0_11 = arith.constant 0 : index
    %c0_12 = arith.constant 0 : index
    %15 = vector.load %arg5[%c0_10, %c1, %c0_11, %c0_12] : memref<1x8x16x16xf32, #tpu.memory_space<vmem>>, vector<1x1x16x16xf32>
    %16 = vector.shape_cast %15 : vector<1x1x16x16xf32> to vector<16x16xf32>
    %17 = vector.shape_cast %14 : vector<16x16xf32> to vector<1x1x16x16xf32>
    tpu.vector_store %arg5[%c0_10, %c1, %c0_11, %c0_12], %17 {strides = array<i32>} : memref<1x8x16x16xf32, #tpu.memory_space<vmem>>, vector<1x1x16x16xf32>,
    %18 = vector.extract_strided_slice %9 {offsets = [0, 32], sizes = [16, 16], strides = [1, 1]} : vector<16x128xf32> to vector<16x16xf32>
    %c0_13 = arith.constant 0 : index
    %c2 = arith.constant 2 : index
    %c0_14 = arith.constant 0 : index
    %c0_15 = arith.constant 0 : index
    %19 = vector.load %arg5[%c0_13, %c2, %c0_14, %c0_15] : memref<1x8x16x16xf32, #tpu.memory_space<vmem>>, vector<1x1x16x16xf32>
    %20 = vector.shape_cast %19 : vector<1x1x16x16xf32> to vector<16x16xf32>
    %21 = vector.shape_cast %18 : vector<16x16xf32> to vector<1x1x16x16xf32>
    tpu.vector_store %arg5[%c0_13, %c2, %c0_14, %c0_15], %21 {strides = array<i32>} : memref<1x8x16x16xf32, #tpu.memory_space<vmem>>, vector<1x1x16x16xf32>,
    %22 = vector.extract_strided_slice %9 {offsets = [0, 48], sizes = [16, 16], strides = [1, 1]} : vector<16x128xf32> to vector<16x16xf32>
    %c0_16 = arith.constant 0 : index
    %c3 = arith.constant 3 : index
    %c0_17 = arith.constant 0 : index
    %c0_18 = arith.constant 0 : index
    %23 = vector.load %arg5[%c0_16, %c3, %c0_17, %c0_18] : memref<1x8x16x16xf32, #tpu.memory_space<vmem>>, vector<1x1x16x16xf32>
    %24 = vector.shape_cast %23 : vector<1x1x16x16xf32> to vector<16x16xf32>
    %25 = vector.shape_cast %22 : vector<16x16xf32> to vector<1x1x16x16xf32>
    tpu.vector_store %arg5[%c0_16, %c3, %c0_17, %c0_18], %25 {strides = array<i32>} : memref<1x8x16x16xf32, #tpu.memory_space<vmem>>, vector<1x1x16x16xf32>,
    %26 = vector.extract_strided_slice %9 {offsets = [0, 64], sizes = [16, 16], strides = [1, 1]} : vector<16x128xf32> to vector<16x16xf32>
    %c0_19 = arith.constant 0 : index
    %c4 = arith.constant 4 : index
    %c0_20 = arith.constant 0 : index
    %c0_21 = arith.constant 0 : index
    %27 = vector.load %arg5[%c0_19, %c4, %c0_20, %c0_21] : memref<1x8x16x16xf32, #tpu.memory_space<vmem>>, vector<1x1x16x16xf32>
    %28 = vector.shape_cast %27 : vector<1x1x16x16xf32> to vector<16x16xf32>
    %29 = vector.shape_cast %26 : vector<16x16xf32> to vector<1x1x16x16xf32>
    tpu.vector_store %arg5[%c0_19, %c4, %c0_20, %c0_21], %29 {strides = array<i32>} : memref<1x8x16x16xf32, #tpu.memory_space<vmem>>, vector<1x1x16x16xf32>,
    %30 = vector.extract_strided_slice %9 {offsets = [0, 80], sizes = [16, 16], strides = [1, 1]} : vector<16x128xf32> to vector<16x16xf32>
    %c0_22 = arith.constant 0 : index
    %c5 = arith.constant 5 : index
    %c0_23 = arith.constant 0 : index
    %c0_24 = arith.constant 0 : index
    %31 = vector.load %arg5[%c0_22, %c5, %c0_23, %c0_24] : memref<1x8x16x16xf32, #tpu.memory_space<vmem>>, vector<1x1x16x16xf32>
    %32 = vector.shape_cast %31 : vector<1x1x16x16xf32> to vector<16x16xf32>
    %33 = vector.shape_cast %30 : vector<16x16xf32> to vector<1x1x16x16xf32>
    tpu.vector_store %arg5[%c0_22, %c5, %c0_23, %c0_24], %33 {strides = array<i32>} : memref<1x8x16x16xf32, #tpu.memory_space<vmem>>, vector<1x1x16x16xf32>,
    %34 = vector.extract_strided_slice %9 {offsets = [0, 96], sizes = [16, 16], strides = [1, 1]} : vector<16x128xf32> to vector<16x16xf32>
    %c0_25 = arith.constant 0 : index
    %c6 = arith.constant 6 : index
    %c0_26 = arith.constant 0 : index
    %c0_27 = arith.constant 0 : index
    %35 = vector.load %arg5[%c0_25, %c6, %c0_26, %c0_27] : memref<1x8x16x16xf32, #tpu.memory_space<vmem>>, vector<1x1x16x16xf32>
    %36 = vector.shape_cast %35 : vector<1x1x16x16xf32> to vector<16x16xf32>
    %37 = vector.shape_cast %34 : vector<16x16xf32> to vector<1x1x16x16xf32>
    tpu.vector_store %arg5[%c0_25, %c6, %c0_26, %c0_27], %37 {strides = array<i32>} : memref<1x8x16x16xf32, #tpu.memory_space<vmem>>, vector<1x1x16x16xf32>,
    %38 = vector.extract_strided_slice %9 {offsets = [0, 112], sizes = [16, 16], strides = [1, 1]} : vector<16x128xf32> to vector<16x16xf32>
    %c0_28 = arith.constant 0 : index
    %c7 = arith.constant 7 : index
    %c0_29 = arith.constant 0 : index
    %c0_30 = arith.constant 0 : index
    %39 = vector.load %arg5[%c0_28, %c7, %c0_29, %c0_30] : memref<1x8x16x16xf32, #tpu.memory_space<vmem>>, vector<1x1x16x16xf32>
    %40 = vector.shape_cast %39 : vector<1x1x16x16xf32> to vector<16x16xf32>
    %41 = vector.shape_cast %38 : vector<16x16xf32> to vector<1x1x16x16xf32>
    tpu.vector_store %arg5[%c0_28, %c7, %c0_29, %c0_30], %41 {strides = array<i32>} : memref<1x8x16x16xf32, #tpu.memory_space<vmem>>, vector<1x1x16x16xf32>,
    return
  }
  func.func @transform_0(%arg0: i32, %arg1: i32) -> (i32, i32, i32) {
    %c0_i32 = arith.constant 0 : i32
    %c0_i32_0 = arith.constant 0 : i32
    return %arg0, %arg1, %c0_i32 : i32, i32, i32
  }
  func.func @transform_1(%arg0: i32, %arg1: i32) -> (i32, i32) {
    %c0_i32 = arith.constant 0 : i32
    %c0_i32_0 = arith.constant 0 : i32
    %c0_i32_1 = arith.constant 0 : i32
    return %c0_i32, %c0_i32_0 : i32, i32
  }
  func.func @transform_2(%arg0: i32, %arg1: i32) -> (i32, i32) {
    %c0_i32 = arith.constant 0 : i32
    %c0_i32_0 = arith.constant 0 : i32
    %c0_i32_1 = arith.constant 0 : i32
    return %c0_i32, %c0_i32_0 : i32, i32
  }
  func.func @transform_3(%arg0: i32, %arg1: i32) -> (i32, i32, i32, i32) {
    %c0_i32 = arith.constant 0 : i32
    %c0_i32_0 = arith.constant 0 : i32
    %c0_i32_1 = arith.constant 0 : i32
    return %arg0, %c0_i32, %arg1, %c0_i32_0 : i32, i32, i32, i32
  }
}

</mosaic_0001>

<bundles_post_ra>
// kernel: fcn_conv_block.3
= control target key start
LH: loop header
LB: loop body
LE: loop exit
PB: predicated region body
PF: predicated region fallthrough
CT: control target
= control target key end

     0   :  { %8 = vsyncpa [#allocation3], 0  ;;  %s727_s0 = inlined_call_operand.vmem [shape: f32[2,16,128], index: 0, kind: input, shape index: {}]   ;;  %s728_s1 = inlined_call_operand.vmem [shape: f32[1,128], index: 1, kind: input, shape index: {}]   ;;  %s729_s2 = inlined_call_operand.vmem [shape: f32[1,128], index: 2, kind: input, shape index: {}]   ;;  %s730_s3 = inlined_call_operand.hbm [shape: f32[2,8,16,16], index: 3, kind: output, shape index: {}]  }
   0x1   :  { %10 = vsyncpa [#allocation3 + $0x1], 0  ;;  %s585_s12 = smov 0   ;;  %s587_s13 = smov 0  }
   0x2   :  { %s589_s14 = smov 0   ;;  %s591_s15 = smov 0  }
   0x3   :  { %s593_s16 = smov 0   ;;  %s595_s17 = smov 0  }
   0x4 LB: > { %s381_s18 = sadd.s32 4294967295, %s554_s17   ;;  %s382_s19 = sadd.s32 4294967294, %s554_s17   ;;  %s554_s17 = sphi %s595_s17, %s16_s17   ;;  %s550_s16 = sphi %s593_s16, %s737_s16   ;;  %s546_s15 = sphi %s591_s15, %s736_s15   ;;  %s542_s14 = sphi %s589_s14, %s735_s14   ;;  %s538_s13 = sphi %s587_s13, %s734_s13   ;;  %s534_s12 = sphi %s585_s12, %s733_s12  }
   0x5   : > { %s28_s20 = sadd.s32 1, %s550_s16  ;;  %s107_s21 = sadd.s32 1, %s542_s14 }
   0x6   : > { %p30_p0 = scmp.ge.s32.totalorder %s28_s20, 2  ;;  %p117_p1 = scmp.ne.s32.totalorder %s542_s14, %s538_s13 }
   0x7   : > { %p118_p2 = scmp.eq.s32.totalorder %s381_s18, 1  ;;  %p123_p3 = scmp.ne.s32.totalorder %s538_s13, %s534_s12 }
   0x8   : > { %s739_s20 = smov (%p30_p0, %s28_s20), 0  ;;  %p124_p5 = scmp.eq.s32.totalorder %s382_s19, 1 }
   0x9   : > { %p625_p4 = por %p118_p2, %p117_p1  ;;  %s102_s23 = ssub.s32 %s550_s16, %s739_s20 }
   0xa   : > { %p385_p6 = scmp.ge.s32.totalorder %s554_s17, 1  ;;  %p105_p7 = scmp.eq.s32.totalorder %s102_s23, 0 }
   0xb   : > { %p632_p8 = por %p124_p5, %p123_p3  ;;  %p161_p9 = scmp.lt.s32.totalorder %s554_s17, 3 }
   0xc   : > { %s638_s25 = scalar_select %p105_p7, %s542_s14, %s107_s21  }
   0xd   : > { %p162_p10 = pnand %p385_p6, %p161_p9 }
   0xe   : > { %p190_p11 = scmp.lt.s32.totalorder (!%p162_p10), %s546_s15, 1  ;;  %s186_s8 = sand.u32 (!%p162_p10), 1, %s538_s13  }
   0xf   : > { %165 = sbr.rel (%p162_p10) target bundleno = 183 (0xb7), region = 32  ;;  %s386_s9 = sshll.u32 (!%p162_p10), %s186_s8, 7 }
  0x10   : > { %s556_s10 = smov (!%p162_p10), 96   ;;  %s654_s11 = scalar_lea.vmem (!%p162_p10), [#allocation2], %s386_s9 }
  0x11   : > { %s557_s18 = smov (!%p162_p10), 112   ;;  %s558_s19 = smov (!%p162_p10), 80  }
  0x12   : > { %s559_s21 = smov (!%p162_p10), 64   ;;  %s560_s23 = smov (!%p162_p10), 48  }
  0x13   : > { %s562_s27 = smov (!%p162_p10), 16   ;;  %s409_s28 = sshll.u32 (!%p162_p10), %s546_s15, 7 }
  0x14   : > { %s191_s26 = scalar_select %p190_p11, %s546_s15, 1  ;;  %v474_v0 = vld [vmem:[%s728_s1] ss:$0 sm:$0xff]  ;;  %vm216_vm0 = vcmask 130048  }
  0x15   : > { %v475_v1 = vld [vmem:[%s729_s2] ss:$0 sm:$0xff]  ;;  %s298_s4 = scalar_lea.hbm %s730_s3, %s409_s28  ;;  %s285_s15 = scalar_lea.sflag [#allocation3], %s186_s8 }
  0x16   : > { %s408_s29 = sshll.u32 %s191_s26, 4  ;;  %s561_s26 = smov 32  }
  0x17   : > { %s197_s5 = scalar_lea.vmem %s727_s0, %s408_s29  ;;  %s301_s6 = sshll.u32 %s298_s4, 4  ;;  %s302_s6 = int_to_ptr.hbm [resolvable:$true] %s301_s6 }
  0x18   : > { %v200_v2 = vld [vmem:[%s197_s5] sm:$0xff]  ;;  %v201_v3 = vld [vmem:[%s197_s5 + $0x8] sm:$0xff]  ;;  %s299_s5 = sshll.u32 %s654_s11, 4  ;;  %s490_s7 = sshra.s32 %s302_s6, 4  ;;  %s300_s5 = int_to_ptr.vmem [resolvable:$true] %s299_s5  ;;  %s491_s7 = int_to_ptr.hbm [resolvable:$true] %s490_s7 }
  0x19   : > { %v206_v4 = vmul.f32 %v474_v0, %v200_v2  ;;  %v207_v5 = vmul.f32 %v474_v0, %v201_v3  ;;  %s492_s9 = scalar_lea.hbm %s491_s7, 128  ;;  %p497_p1 = scmp.lt.s32.totalorder %s491_s7, %s730_s3 }
  0x1a   : > { %p493_p12 = scmp.ne.s32.totalorder %s491_s7, %s492_s9 }
  0x1b   : > { %v212_v6 = vadd.f32 %v475_v1, %v206_v4  ;;  %v213_v7 = vadd.f32 %v475_v1, %v207_v5 }
  0x1c   : > { %p494_p13 = pnand %p493_p12, %p625_p4 }
  0x1d   : > { %v214_v8 = vmax.f32 %v212_v6, 0.0  ;;  %v215_v9 = vmax.f32 %v213_v7, 0.0 }
  0x1e   : > { %p495_p0 = pneg %p494_p13 }
  0x1f   : > { %230 = vrot.lane.b32.xlu1 %v214_v8, %s556_s10  ;;  %217 = vst.msk [vmem:[%s654_s11] sm:$0xff] %vm216_vm0, %v214_v8  ;;  %221 = vrot.lane.b32.xlu0 %v214_v8, %s557_s18 }
  0x20   : > { %218 = vst.msk [vmem:[%s654_s11 + $0x8] sm:$0xff] %vm216_vm0, %v215_v9  ;;  %239 = vrot.lane.b32.xlu2 %v214_v8, %s558_s19 }
  0x27   : > { %232 = vrot.lane.b32.xlu1 %v215_v9, %s556_s10  ;;  %223 = vrot.lane.b32.xlu0 %v215_v9, %s557_s18 }
  0x28   : > { %241 = vrot.lane.b32.xlu2 %v215_v9, %s558_s19  ;;  %s496_s19 = scalar_lea.hbm %s730_s3, 256 }
  0x29   : > { %p498_p2 = scmp.lt.s32.totalorder %s496_s19, %s492_s9 }
  0x2b   : > { %p499_p3 = por %p498_p2, %p497_p1 }
  0x2d   : > { %p500_p5 = pnand %p499_p3, %p495_p0 }
  0x2f   : > { %250 = vrot.lane.b32.xlu1 %v215_v9, %s559_s21  ;;  %248 = vrot.lane.b32.xlu0 %v214_v8, %s559_s21 }
  0x30   : > { %257 = vrot.lane.b32.xlu2 %v214_v8, %s560_s23 }
  0x37   : > { %266 = vrot.lane.b32.xlu1 %v214_v8, %s561_s26  ;;  %259 = vrot.lane.b32.xlu0 %v215_v9, %s560_s23 }
  0x38   : > { %268 = vrot.lane.b32.xlu2 %v215_v9, %s561_s26 }
  0x3f   : > { %277 = vrot.lane.b32.xlu1 %v215_v9, %s562_s27  ;;  %275 = vrot.lane.b32.xlu0 %v214_v8, %s562_s27 }
  0x7a   : > { %v240_v10 = vpop.permute.xlu2 %239 }
  0x7b   : > { %393 = vst.msk [vmem:[%s654_s11 + $0x30] sm:$0xff] %vm216_vm0, %v240_v10 }
  0x82   : > { %v242_v11 = vpop.permute.xlu2 %241 }
  0x83   : > { %394 = vst.msk [vmem:[%s654_s11 + $0x38] sm:$0xff] %vm216_vm0, %v242_v11 }
  0x8a   : > { %v258_v12 = vpop.permute.xlu2 %257 }
  0x8b   : > { %397 = vst.msk [vmem:[%s654_s11 + $0x50] sm:$0xff] %vm216_vm0, %v258_v12 }
  0x91   : > { %v231_v13 = vpop.permute.xlu1 %230  ;;  %v222_v14 = vpop.permute.xlu0 %221 }
  0x92   : > { %391 = vst.msk [vmem:[%s654_s11 + $0x20] sm:$0xff] %vm216_vm0, %v231_v13  ;;  %v269_v15 = vpop.permute.xlu2 %268 }
  0x93   : > { %389 = vst.msk [vmem:[%s654_s11 + $0x10] sm:$0xff] %vm216_vm0, %v222_v14 }
  0x94   : > { %400 = vst.msk [vmem:[%s654_s11 + $0x68] sm:$0xff] %vm216_vm0, %v269_v15 }
  0x99   : > { %v233_v16 = vpop.permute.xlu1 %232  ;;  %v224_v17 = vpop.permute.xlu0 %223 }
  0x9a   : > { %392 = vst.msk [vmem:[%s654_s11 + $0x28] sm:$0xff] %vm216_vm0, %v233_v16 }
  0x9b   : > { %390 = vst.msk [vmem:[%s654_s11 + $0x18] sm:$0xff] %vm216_vm0, %v224_v17 }
  0xa1   : > { %v251_v18 = vpop.permute.xlu1 %250  ;;  %v249_v19 = vpop.permute.xlu0 %248 }
  0xa2   : > { %396 = vst.msk [vmem:[%s654_s11 + $0x48] sm:$0xff] %vm216_vm0, %v251_v18 }
  0xa3   : > { %395 = vst.msk [vmem:[%s654_s11 + $0x40] sm:$0xff] %vm216_vm0, %v249_v19 }
  0xa9   : > { %v267_v20 = vpop.permute.xlu1 %266  ;;  %v260_v21 = vpop.permute.xlu0 %259 }
  0xaa   : > { %399 = vst.msk [vmem:[%s654_s11 + $0x60] sm:$0xff] %vm216_vm0, %v267_v20 }
  0xab   : > { %398 = vst.msk [vmem:[%s654_s11 + $0x58] sm:$0xff] %vm216_vm0, %v260_v21 }
  0xb1   : > { %v278_v22 = vpop.permute.xlu1 %277  ;;  %v276_v23 = vpop.permute.xlu0 %275 }
  0xb2   : > { %402 = vst.msk [vmem:[%s654_s11 + $0x78] sm:$0xff] %vm216_vm0, %v278_v22 }
  0xb3   : > { %401 = vst.msk [vmem:[%s654_s11 + $0x70] sm:$0xff] %vm216_vm0, %v276_v23 }
  0xb4   : > { %503 = shalt.err (!%p500_p5)
}
  0xb5   : > { %s563_s8 = smov 128   ;;  %s564_s11 = smov 8  }
  0xb6   : > { %410 = dma.vmem_to_hbm [thread:$0]  (%p625_p4), %s300_s5, 2048, %s302_s6, %s285_s15, %s563_s8, %s563_s8, %s564_s11  }
  0xb7 PF: > { %p416_p6 = scmp.ge.s32.totalorder %s554_s17, 2  ;;  %s316_s26 = sand.u32 1, %s534_s12  }
  0xb8   : > { %s317_s27 = scalar_lea.sflag [#allocation3], %s316_s26 }
  0xb9   : > { %p413_p7 = pnand %p416_p6, %p632_p8 }
  0xbb   : > { %p414_p9 = pneg %p413_p7 }
  0xbd   : > { %529 = dma.done.wait (%p414_p9), %s317_s27, 2048  }
  0xbe   : > { %531 = vsyncadd (%p414_p9), %s317_s27, 4294965248  ;;  %s16_s17 = sadd.s32 1, %s554_s17   ;;  %s733_s12 = smov %s538_s13 }
  0xbf   : > { %p13_p10 = scmp.ge.s32.totalorder %s16_s17, 4   ;;  %s734_s13 = smov %s542_s14 }
  0xc0   : > { %s735_s14 = smov %s638_s25  ;;  %s736_s15 = smov %s550_s16 }
  0xc1   : > { %s737_s16 = smov %s739_s20  ;;  %15 = sbr.rel (!%p13_p10) target bundleno = 4 (0x4), region = 74 }
  0xc6   :  { %323 = vsyncpa [#allocation3], 1 }
  0xc7   :  { %325 = vsyncpa [#allocation3 + $0x1], 1 }

// kernel: fcn_conv_block.2
= control target key start
LH: loop header
LB: loop body
LE: loop exit
PB: predicated region body
PF: predicated region fallthrough
CT: control target
= control target key end

     0   :  { %s894_s18 = smov 0   ;;  %s896_s19 = smov 0   ;;  %s985_s0 = inlined_call_operand.vmem [shape: f32[2,4,16,16], index: 0, kind: input, shape index: {}]   ;;  %s986_s1 = inlined_call_operand.vmem [shape: bf16[3,64,128], index: 1, kind: input, shape index: {}]   ;;  %s987_s2 = inlined_call_operand.vmem [shape: f32[1,128], index: 2, kind: input, shape index: {}]   ;;  %s988_s3 = inlined_call_operand.vmem [shape: f32[2,16,128], index: 3, kind: output, shape index: {0}]   ;;  %s989_s4 = inlined_call_operand.vmem [shape: f32[2,1,1,128], index: 4, kind: output, shape index: {1}]   ;;  %s990_s5 = inlined_call_operand.vmem [shape: f32[2,1,1,128], index: 5, kind: output, shape index: {2}]  }
   0x1   :  { %s898_s20 = smov 0  }
   0x2 LB: > { %s28_s21 = sadd.s32 1, %s854_s19  ;;  %p713_p0 = scmp.ge.s32.totalorder %s858_s20, 1  ;;  %s858_s20 = sphi %s898_s20, %s16_s20   ;;  %s854_s19 = sphi %s896_s19, %s992_s19   ;;  %s850_s18 = sphi %s894_s18, %s991_s18  }
   0x3   : > { %p30_p1 = scmp.ge.s32.totalorder %s28_s21, 2  ;;  %p210_p2 = scmp.lt.s32.totalorder %s858_s20, 3 }
   0x5   : > { %s994_s21 = smov (%p30_p1, %s28_s21), 0  ;;  %p211_p3 = pnand %p713_p0, %p210_p2 }
   0x6   : > { %p254_p4 = scmp.lt.s32.totalorder (!%p211_p3), %s850_s18, 1  ;;  %s861_s26 = smov (!%p211_p3), 16  }
   0x7   : > { %214 = sbr.rel (%p211_p3) target bundleno = 319 (0x13f), region = 32  ;;  %s862_s27 = smov (!%p211_p3), 32  }
   0x8   : > { %s863_s28 = smov (!%p211_p3), 48  }
   0xc   : > { %vm286_vm0 = vcmask 523264   ;;  %v860_v0 = vmov 0.0   ;;  %s996_s18 = smov (!%p254_p4, %s850_s18), 1  ;;  %vm293_vm1 = vcmask 130048   ;;  %v802_v8 = vld [vmem:[%s986_s1 + $0x38] sm:$0xff]  ;;  %v801_v10 = vld [vmem:[%s986_s1 + $0x30] sm:$0xff] }
   0xd   : > { %287 = vst.msk [vmem:[#allocation2] sm:$0xff] %vm286_vm0, %v860_v0  ;;  %s793_s22 = sshll.u32 %s996_s18, 6  ;;  %397 = vmatpush.bf16.msra.mxu0 %v802_v8  ;;  %v798_v11 = vld [vmem:[%s986_s1 + $0x18] sm:$0xff]  ;;  %v800_v13 = vld [vmem:[%s986_s1 + $0x28] sm:$0xff]  ;;  %v797_v14 = vld [vmem:[%s986_s1 + $0x10] sm:$0xff]  ;;  %vm307_vm2 = vcmask 261248   ;;  %s274_s15 = scalar_lea.vmem %s989_s4, %s996_s18 }
   0xe   : > { %288 = vst.msk [vmem:[#allocation2 + $0x8] sm:$0xff] %vm286_vm0, %v860_v0  ;;  %s258_s25 = scalar_lea.vmem %s985_s0, %s793_s22  ;;  %v806_v12 = vld [vmem:[%s986_s1 + $0x58] sm:$0xff]  ;;  %456 = vmatpush.bf16.msra.mxu1 %v798_v11  ;;  %v805_v15 = vld [vmem:[%s986_s1 + $0x50] sm:$0xff]  ;;  %v799_v16 = vld [vmem:[%s986_s1 + $0x20] sm:$0xff]  ;;  %vm321_vm3 = vcmask 392448   ;;  %vm335_vm4 = vcmask 523648   ;;  %s280_s22 = scalar_lea.vmem %s990_s5, %s996_s18 }
   0xf   : > { %290 = vst.msk [vmem:[#allocation2 + $0x18] sm:$0xff] %vm286_vm0, %v860_v0  ;;  %v718_v1 = vld [vmem:[%s258_s25 + $0x10] sm:$0xff]  ;;  %v720_v2 = vld [vmem:[%s258_s25 + $0x20] sm:$0xff]  ;;  %v719_v4 = vld [vmem:[%s258_s25 + $0x18] sm:$0xff]  ;;  %518 = vmatpush.bf16.msra.mxu2 %v806_v12  ;;  %vm407_vm5 = vsmask.f32 4352 }
  0x10   : > { %289 = vst.msk [vmem:[#allocation2 + $0x10] sm:$0xff] %vm286_vm0, %v860_v0  ;;  %301 = vrot.lane.b32.xlu0 %v718_v1, %s861_s26  ;;  %315 = vrot.lane.b32.xlu1 %v720_v2, %s862_s27  ;;  %v722_v3 = vld [vmem:[%s258_s25 + $0x30] sm:$0xff]  ;;  %v721_v5 = vld [vmem:[%s258_s25 + $0x28] sm:$0xff]  ;;  %vm475_vm6 = vsmask.f32 7424  ;;  %s794_s7 = sshll.u32 %s996_s18, 4 }
  0x11   : > { %329 = vrot.lane.b32.xlu2 %v722_v3, %s863_s28  ;;  %v723_v6 = vld [vmem:[%s258_s25 + $0x38] sm:$0xff]  ;;  %v291_v7 = vld [vmem:[%s258_s25] sm:$0xff]  ;;  %v292_v9 = vld [vmem:[%s258_s25 + $0x8] sm:$0xff]  ;;  %398 = vmatpush.bf16.msra.mxu0 %v801_v10  ;;  %s267_s12 = scalar_lea.vmem %s988_s3, %s794_s7 }
  0x12   : > { %294 = vst.msk [vmem:[#allocation2 + $0x8] sm:$0xff] %vm293_vm1, %v291_v7  ;;  %457 = vmatpush.bf16.msra.mxu1 %v797_v14  ;;  %v796_v17 = vld [vmem:[%s986_s1 + $0x8] sm:$0xff]  ;;  %v795_v19 = vld [vmem:[%s986_s1] sm:$0xff] }
  0x13   : > { %295 = vst.msk [vmem:[#allocation2 + $0x10] sm:$0xff] %vm293_vm1, %v292_v9  ;;  %519 = vmatpush.bf16.msra.mxu2 %v805_v15  ;;  %v804_v18 = vld [vmem:[%s986_s1 + $0x48] sm:$0xff]  ;;  %v803_v20 = vld [vmem:[%s986_s1 + $0x40] sm:$0xff] }
  0x14   : > { %v340_v27 = vld [vmem:[#allocation2] sm:$0xff] }
  0x15   : > { %399 = vmatpush.bf16.msra.mxu0 %v800_v13  ;;  %v835_v56 = vld [vmem:[%s987_s2] ss:$0 sm:$0xff] }
  0x16   : > { %458 = vmatpush.bf16.msra.mxu1 %v796_v17  ;;  %v343_v29 = vld [vmem:[#allocation2 + $0x18] sm:$0xff] }
  0x17   : > { %520 = vmatpush.bf16.msra.mxu2 %v804_v18  ;;  %v347_v31 = vpack.c.bf16 %v343_v29, %v343_v29 }
  0x18   : > { %303 = vrot.lane.b32.xlu0 %v719_v4, %s861_s26  ;;  %317 = vrot.lane.b32.xlu1 %v721_v5, %s862_s27 }
  0x19   : > { %331 = vrot.lane.b32.xlu2 %v723_v6, %s863_s28  ;;  %400 = vmatpush.bf16.msra.mxu0 %v799_v16  ;;  %v483_v35 = vshll.u32 %v347_v31, 16 }
  0x1a   : > { %459 = vmatpush.bf16.msra.mxu1 %v795_v19 }
  0x1b   : > { %521 = vmatpush.bf16.msra.mxu2 %v803_v20  ;;  %v485_v43 = vrot.slane %v483_v35, 1 }
  0x6b   : > { %v330_v21 = vpop.permute.xlu2 %329 }
  0x73   : > { %v332_v24 = vpop.permute.xlu2 %331 }
  0x82   : > { %v302_v22 = vpop.permute.xlu0 %301  ;;  %v316_v23 = vpop.permute.xlu1 %315 }
  0x83   : > { %308 = vst.msk [vmem:[#allocation2 + $0x8] sm:$0xff] %vm307_vm2, %v302_v22 }
  0x84   : > { %322 = vst.msk [vmem:[#allocation2 + $0x8] sm:$0xff] %vm321_vm3, %v316_v23 }
  0x85   : > { %336 = vst.msk [vmem:[#allocation2 + $0x8] sm:$0xff] %vm335_vm4, %v330_v21 }
  0x8a   : > { %v304_v25 = vpop.permute.xlu0 %303  ;;  %v318_v26 = vpop.permute.xlu1 %317 }
  0x8b   : > { %309 = vst.msk [vmem:[#allocation2 + $0x10] sm:$0xff] %vm307_vm2, %v304_v25 }
  0x8c   : > { %323 = vst.msk [vmem:[#allocation2 + $0x10] sm:$0xff] %vm321_vm3, %v318_v26  ;;  %v341_v28 = vld [vmem:[#allocation2 + $0x8] sm:$0xff] }
  0x8d   : > { %337 = vst.msk [vmem:[#allocation2 + $0x10] sm:$0xff] %vm335_vm4, %v332_v24  ;;  %v344_v30 = vpack.c.bf16 %v341_v28, %v340_v27 }
  0x8f   : > { %v409_v32 = vshrl.u32 %v344_v30, 16  ;;  %v412_v33 = vshll.u32 %v344_v30, 16 }
  0x91   : > { %v411_v38 = vrot.slane %v409_v32, 3  ;;  %v414_v42 = vrot.slane %v412_v33, 4 }
  0x93   : > { %v415_v48 = vor.u32 %v414_v42, %v411_v38 }
  0x94   : > { %v342_v34 = vld [vmem:[#allocation2 + $0x10] sm:$0xff] }
  0x95   : > { %v345_v36 = vpack.c.bf16 %v342_v34, %v342_v34  ;;  %v346_v37 = vpack.c.bf16 %v342_v34, %v341_v28 }
  0x97   : > { %748 = vmatmul.msk.bf16.vlgmr.msra.gmra.mxu0 %vm286_vm0, %v346_v37  ;;  %v417_v39 = vshrl.u32 %v345_v36, 16  ;;  %v420_v40 = vshll.u32 %v345_v36, 16  ;;  %v478_v41 = vshll.u32 %v346_v37, 16  ;;  %v476_v46 = vshrl.u32 %v346_v37, 16 }
  0x99   : > { %v419_v44 = vrot.slane %v417_v39, 3  ;;  %v422_v45 = vrot.slane %v420_v40, 4  ;;  %v480_v47 = vrot.slane %v478_v41, 1 }
  0x9b   : > { %v423_v49 = vor.u32 %v422_v45, %v419_v44  ;;  %v481_v50 = vor.u32 %v480_v47, %v476_v46 }
  0x9d   : > { %v424_v51 = vsel %vm407_vm5, %v415_v48, %v423_v49  ;;  %v486_v52 = vsel %vm475_vm6, %v481_v50, %v485_v43 }
  0x9e   : > { %765 = vmatmul.msk.bf16.vlgmr.msra.gmra.mxu1 %vm286_vm0, %v424_v51  ;;  %790 = vmatmul.msk.bf16.vlgmr.msra.gmra.mxu2 %vm286_vm0, %v486_v52 }
 0x114   : > { %v402_v54 = vpop.f32.mrf.mxu0 }
 0x11b   : > { %v461_v53 = vpop.f32.mrf.mxu1 }
 0x11c   : > { %v462_v55 = vadd.f32 %v461_v53, %v402_v54  ;;  %v404_v61 = vpop.f32.mrf.mxu0 }
 0x121   : > { %v523_v57 = vpop.f32.mrf.mxu2 }
 0x122   : > { %v528_v58 = vadd.f32 %v523_v57, %v462_v55 }
 0x123   : > { %v463_v60 = vpop.f32.mrf.mxu1 }
 0x124   : > { %v534_v59 = vadd.f32 %v835_v56, %v528_v58  ;;  %v464_v62 = vadd.f32 %v463_v60, %v404_v61 }
 0x126   : > { %536 = vst [vmem:[%s267_s12] sm:$0xff] %v534_v59  ;;  %v546_v2 = vmul.f32 %v534_v59, %v534_v59 }
 0x129   : > { %v525_v63 = vpop.f32.mrf.mxu2 }
 0x12a   : > { %v529_v0 = vadd.f32 %v525_v63, %v464_v62 }
 0x12c   : > { %v535_v1 = vadd.f32 %v835_v56, %v529_v0 }
 0x12e   : > { %537 = vst [vmem:[%s267_s12 + $0x8] sm:$0xff] %v535_v1  ;;  %v538_v3 = vadd.f32 %v535_v1, %v534_v59  ;;  %v547_v4 = vmul.f32 %v535_v1, %v535_v1 }
 0x130   : > { %v539_v5 = vrot.slane %v538_v3, 4  ;;  %v548_v6 = vadd.f32 %v547_v4, %v546_v2 }
 0x132   : > { %v540_v7 = vadd.f32 %v539_v5, %v538_v3  ;;  %v549_v8 = vrot.slane %v548_v6, 4 }
 0x134   : > { %v541_v9 = vrot.slane %v540_v7, 2  ;;  %v550_v10 = vadd.f32 %v549_v8, %v548_v6 }
 0x136   : > { %v542_v11 = vadd.f32 %v541_v9, %v540_v7  ;;  %v551_v12 = vrot.slane %v550_v10, 2 }
 0x138   : > { %v543_v13 = vrot.slane %v542_v11, 1  ;;  %v552_v14 = vadd.f32 %v551_v12, %v550_v10 }
 0x13a   : > { %v544_v15 = vadd.f32 %v543_v13, %v542_v11  ;;  %v553_v16 = vrot.slane %v552_v14, 1 }
 0x13c   : > { %545 = vst [vmem:[%s274_s15] sm:$0x1] %v544_v15  ;;  %v554_v17 = vadd.f32 %v553_v16, %v552_v14 }
 0x13e   : > { %555 = vst [vmem:[%s280_s22] sm:$0x1] %v554_v17 }
 0x13f PF: > { %s16_s20 = sadd.s32 1, %s858_s20   ;;  %s991_s18 = smov %s854_s19 }
 0x140   : > { %p13_p5 = scmp.ge.s32.totalorder %s16_s20, 4   ;;  %s992_s19 = smov %s994_s21 }
 0x142   :  { %15 = sbr.rel (!%p13_p5) target bundleno = 2 (0x2), region = 96 }

</bundles_post_ra>
